<compile_context>
chip_gen: v7x
topology: tpu7x:2x2x1
jax: 0.10.0
libtpu: 0.0.40
codegen_flags: <defaults>
</compile_context>

<pallas_src>
import jax
import jax.numpy as jnp
from jax.experimental import pallas as pl
from jax.experimental.pallas import tpu as pltpu


def _round_up(x, m):
    return ((x + m - 1) // m) * m


def _pick_tiles(n1, n2, d):
    """MXU/lane-friendly tiles, capped so VMEM stays small on every TPU gen."""
    tm = 256 if n1 > 256 else max(8, _round_up(n1, 8))        # sublane-aligned
    tn = 256 if n2 > 256 else _round_up(n2, 128)              # lane-dense output
    tk = 512 if d > 512 else _round_up(d, 128)                # lane-dense LHS
    return tm, tn, tk


def _mne_matmul_relu_kernel(x1_ref, x2t_ref, o_ref, acc_ref):
    """x1_ref:(tm,tk) bf16, x2t_ref:(tk,tn) bf16, o_ref:(tm,tn), acc:(tm,tn) f32."""
    @pl.when(pl.program_id(2) == 0)
    def _init():
        acc_ref[...] = jnp.zeros_like(acc_ref)

    acc_ref[...] += jnp.dot(
        x1_ref[...], x2t_ref[...], preferred_element_type=jnp.float32
    )

    @pl.when(pl.program_id(2) == pl.num_programs(2) - 1)
    def _finalize():
        # ReLU (inneract) on the f32 accumulator, then cast to output dtype.
        o_ref[...] = jnp.maximum(acc_ref[...], 0.0).astype(o_ref.dtype)


@jax.jit
def mne_one_pair(x1, x2):
    """output = relu(x1 @ x2.T) computed in a tiled, pipelined Pallas TPU kernel."""
    n1, d = x1.shape
    n2, d2 = x2.shape
    assert d == d2, "feature dims must match"

    tm, tn, tk = _pick_tiles(n1, n2, d)
    mp = _round_up(n1, tm)
    np_ = _round_up(n2, tn)
    kp = _round_up(d, tk)

    # bf16 inputs (f32 accumulation inside the kernel); zero padding is safe
    # because padded rows/cols contribute zeros and relu(0) = 0.
    x1p = jnp.pad(x1.astype(jnp.bfloat16), ((0, mp - n1), (0, kp - d)))
    # Pre-transpose the RHS once in HBM so the kernel tiles are (tk, tn).
    x2t = jnp.pad(x2.astype(jnp.bfloat16), ((0, np_ - n2), (0, kp - d))).T

    grid = (mp // tm, np_ // tn, kp // tk)
    out_dtype = jnp.float32  # could be bf16 to halve writeback if downstream allows

    out_padded = pl.pallas_call(
        _mne_matmul_relu_kernel,
        out_shape=jax.ShapeDtypeStruct((mp, np_), out_dtype),
        grid_spec=pltpu.PrefetchScalarGridSpec(
            num_scalar_prefetch=0,
            grid=grid,
            in_specs=[
                pl.BlockSpec((tm, tk), lambda i, j, k: (i, k)),
                pl.BlockSpec((tk, tn), lambda i, j, k: (k, j)),
            ],
            out_specs=pl.BlockSpec((tm, tn), lambda i, j, k: (i, j)),
            scratch_shapes=[pltpu.VMEM((tm, tn), jnp.float32)],
        ),
        compiler_params=pltpu.CompilerParams(
            dimension_semantics=("parallel", "parallel", "arbitrary"),
            vmem_limit_bytes=32 * 1024 * 1024,  # safe on v5e/v6e/v7x
        ),
    )(x1p, x2t)

    return out_padded[:n1, :n2]


def mne_forward(inputs):
    """Mirrors MNE.forward: accepts a pair [x1, x2] or a list of pairs."""
    assert isinstance(inputs, list) and inputs
    if isinstance(inputs[0], list):
        # TODO(synk): bucket-pad and batch pairs through one pallas_call to
        # amortize dispatch overhead for large pair lists.
        return [mne_one_pair(p[0], p[1]) for p in inputs]
    assert len(inputs) == 2
    return mne_one_pair(inputs[0], inputs[1])


def _reference(x1, x2):
    """Reference using the same bf16 input quantization, f32 accumulation."""
    a = x1.astype(jnp.bfloat16).astype(jnp.float32)
    b = x2.astype(jnp.bfloat16).astype(jnp.float32)
    return jnp.maximum(a @ b.T, 0.0)


if __name__ == "__main__":
    key = jax.random.PRNGKey(0)
    k1, k2, k3, k4 = jax.random.split(key, 4)

    # Small SimGNN-sized pair (node counts N1, N2; node-embedding dim D).
    N1, N2, D = 16, 24, 32
    x1 = jax.random.normal(k1, (N1, D), dtype=jnp.float32)
    x2 = jax.random.normal(k2, (N2, D), dtype=jnp.float32)
    out = jax.block_until_ready(mne_forward([x1, x2]))
    ref = _reference(x1, x2)
    assert out.shape == (N1, N2)
    assert jnp.allclose(out, ref, atol=2e-2, rtol=2e-2)

    # Larger, non-tile-aligned pair: exercises padding, a multi-tile grid,
    # and megacore-parallel M/N axes.
    M1, M2, D2 = 300, 333, 160
    y1 = jax.random.normal(k3, (M1, D2), dtype=jnp.float32)
    y2 = jax.random.normal(k4, (M2, D2), dtype=jnp.float32)
    out2 = jax.block_until_ready(mne_one_pair(y1, y2))
    ref2 = _reference(y1, y2)
    assert out2.shape == (M1, M2)
    assert jnp.allclose(out2, ref2, atol=2e-2, rtol=2e-2)

    print("KERNEL_OK")
</pallas_src>

<mosaic_0001>
module attributes {stable_mosaic.version = 11 : i64} {
  func.func @_mne_matmul_relu_kernel(%arg0: i32, %arg1: i32, %arg2: i32, %arg3: memref<16x128xbf16, #tpu.memory_space<vmem>>, %arg4: memref<128x128xbf16, #tpu.memory_space<vmem>>, %arg5: memref<16x128xf32, #tpu.memory_space<vmem>>, %arg6: memref<16x128xf32, #tpu.memory_space<vmem>>) attributes {dimension_semantics = [#tpu.dimension_semantics<parallel>, #tpu.dimension_semantics<parallel>, #tpu.dimension_semantics<arbitrary>], iteration_bounds = array<i64: 1, 1, 1>, scalar_prefetch = 0 : i64, scratch_operands = 1 : i64, tpu.core_type = #tpu.core_type<tc>, window_params = [{transform_indices = @transform_0, window_bounds = array<i64: 16, 128>}, {transform_indices = @transform_1, window_bounds = array<i64: 128, 128>}, {transform_indices = @transform_2, window_bounds = array<i64: 16, 128>}]} {
    %c0_i32 = arith.constant 0 : i32
    %0 = arith.cmpi eq, %arg2, %c0_i32 : i32
    %1 = arith.extui %0 : i1 to i32
    %c0_i32_0 = arith.constant 0 : i32
    %2 = arith.cmpi ne, %1, %c0_i32_0 : i32
    scf.if %2 {
      %cst_10 = arith.constant 0.000000e+00 : f32
      %12 = vector.broadcast %cst_10 : f32 to vector<16x128xf32>
      %c0_11 = arith.constant 0 : index
      %c0_12 = arith.constant 0 : index
      %13 = vector.load %arg6[%c0_11, %c0_12] : memref<16x128xf32, #tpu.memory_space<vmem>>, vector<16x128xf32>
      tpu.vector_store %arg6[%c0_11, %c0_12], %12 {strides = array<i32>} : memref<16x128xf32, #tpu.memory_space<vmem>>, vector<16x128xf32>,
    } else {
    }
    %c0 = arith.constant 0 : index
    %c0_1 = arith.constant 0 : index
    %3 = vector.load %arg6[%c0, %c0_1] : memref<16x128xf32, #tpu.memory_space<vmem>>, vector<16x128xf32>
    %c0_2 = arith.constant 0 : index
    %c0_3 = arith.constant 0 : index
    %4 = vector.load %arg3[%c0_2, %c0_3] : memref<16x128xbf16, #tpu.memory_space<vmem>>, vector<16x128xbf16>
    %c0_4 = arith.constant 0 : index
    %c0_5 = arith.constant 0 : index
    %5 = vector.load %arg4[%c0_4, %c0_5] : memref<128x128xbf16, #tpu.memory_space<vmem>>, vector<128x128xbf16>
    %cst = arith.constant dense<0.000000e+00> : vector<16x128xf32>
    %6 = tpu.matmul %4, %5, %cst {dimension_numbers = #tpu.dot_dimension_numbers<[1], [0], [0], [1], [0, 0, 1, 1], [], []>} : vector<16x128xbf16>, vector<128x128xbf16>, vector<16x128xf32> -> vector<16x128xf32>
    %7 = arith.addf %3, %6 : vector<16x128xf32>
    %c0_6 = arith.constant 0 : index
    %c0_7 = arith.constant 0 : index
    %8 = vector.load %arg6[%c0_6, %c0_7] : memref<16x128xf32, #tpu.memory_space<vmem>>, vector<16x128xf32>
    tpu.vector_store %arg6[%c0_6, %c0_7], %7 {strides = array<i32>} : memref<16x128xf32, #tpu.memory_space<vmem>>, vector<16x128xf32>,
    %c0_i32_8 = arith.constant 0 : i32
    %9 = arith.cmpi eq, %arg2, %c0_i32_8 : i32
    %10 = arith.extui %9 : i1 to i32
    %c0_i32_9 = arith.constant 0 : i32
    %11 = arith.cmpi ne, %10, %c0_i32_9 : i32
    scf.if %11 {
      %c0_10 = arith.constant 0 : index
      %c0_11 = arith.constant 0 : index
      %12 = vector.load %arg6[%c0_10, %c0_11] : memref<16x128xf32, #tpu.memory_space<vmem>>, vector<16x128xf32>
      %cst_12 = arith.constant 0.000000e+00 : f32
      %13 = vector.broadcast %cst_12 : f32 to vector<16x128xf32>
      %14 = arith.maximumf %12, %13 : vector<16x128xf32>
      %c0_13 = arith.constant 0 : index
      %c0_14 = arith.constant 0 : index
      %15 = vector.load %arg5[%c0_13, %c0_14] : memref<16x128xf32, #tpu.memory_space<vmem>>, vector<16x128xf32>
      tpu.vector_store %arg5[%c0_13, %c0_14], %14 {strides = array<i32>} : memref<16x128xf32, #tpu.memory_space<vmem>>, vector<16x128xf32>,
    } else {
    }
    return
  }
  func.func @transform_0(%arg0: i32, %arg1: i32, %arg2: i32) -> (i32, i32) {
    %c0_i32 = arith.constant 0 : i32
    return %arg0, %arg2 : i32, i32
  }
  func.func @transform_1(%arg0: i32, %arg1: i32, %arg2: i32) -> (i32, i32) {
    %c0_i32 = arith.constant 0 : i32
    return %arg2, %arg1 : i32, i32
  }
  func.func @transform_2(%arg0: i32, %arg1: i32, %arg2: i32) -> (i32, i32) {
    %c0_i32 = arith.constant 0 : i32
    return %arg0, %arg1 : i32, i32
  }
}

</mosaic_0001>

<bundles_post_ra>
// kernel: mne_one_pair.1
= control target key start
LH: loop header
LB: loop body
LE: loop exit
PB: predicated region body
PF: predicated region fallthrough
CT: control target
= control target key end

     0   :  { %v239_v1 = vmov 0.0   ;;  %vm240_vm0 = vmmov 0   ;;  %s298_s0 = inlined_call_operand.vmem [shape: bf16[16,128], index: 0, kind: input, shape index: {}]   ;;  %s299_s1 = inlined_call_operand.vmem [shape: bf16[128,128], index: 1, kind: input, shape index: {}]   ;;  %s300_s2 = inlined_call_operand.hbm [shape: f32[16,128], index: 2, kind: output, shape index: {}]  }
   0x1   :  { %v206_v0 = vld [vmem:[%s299_s1] sm:$0xff]   ;;  %181 = vmatprep.subr.bf16.mxu0 %v239_v1  ;;  %v207_v2 = vld [vmem:[%s299_s1 + $0x8] sm:$0xff]   ;;  %197 = vmatprep.mubr.msk.bf16.mxu0 %vm240_vm0, %v239_v1  ;;  %v208_v3 = vld [vmem:[%s299_s1 + $0x10] sm:$0xff]  }
   0x2   :  { %182 = vmatpush3.bf16.msra.mxu0 %v206_v0 }
   0x3   :  { %183 = vmatprep.subr.bf16.mxu0 %v239_v1 }
   0x6   :  { %184 = vmatpush3.bf16.msra.mxu0 %v207_v2 }
   0x7   :  { %185 = vmatprep.subr.bf16.mxu0 %v239_v1 }
   0x8   :  { %7 = vsyncpa [#allocation4], 0  ;;  %v209_v4 = vld [vmem:[%s299_s1 + $0x18] sm:$0xff]   ;;  %v210_v5 = vld [vmem:[%s299_s1 + $0x20] sm:$0xff]   ;;  %s241_s27 = smov [#allocation3]  }
   0x9   :  { %v211_v6 = vld [vmem:[%s299_s1 + $0x28] sm:$0xff]   ;;  %v212_v7 = vld [vmem:[%s299_s1 + $0x30] sm:$0xff]   ;;  %v213_v8 = vld [vmem:[%s299_s1 + $0x38] sm:$0xff]   ;;  %s152_s28 = sshll.u32 %s241_s27, 4  ;;  %s153_s28 = int_to_ptr.vmem [resolvable:$true] %s152_s28 }
   0xa   :  { %186 = vmatpush3.bf16.msra.mxu0 %v208_v3  ;;  %v214_v9 = vld [vmem:[%s298_s0] sm:$0xff]   ;;  %s215_s29 = scalar_lea.vmem %s153_s28, 256  ;;  %p220_p1 = scmp.lt.s32.totalorder %s153_s28, %s153_s28 }
   0xb   :  { %187 = vmatprep.subr.bf16.mxu0 %v239_v1  ;;  %p216_p0 = scmp.ne.s32.totalorder %s153_s28, %s215_s29  ;;  %p221_p2 = scmp.lt.s32.totalorder %s215_s29, %s215_s29 }
   0xd   :  { %p222_p3 = por %p221_p2, %p220_p1 }
   0xe   :  { %188 = vmatpush3.bf16.msra.mxu0 %v209_v4 }
   0xf   :  { %189 = vmatprep.subr.bf16.mxu0 %v239_v1  ;;  %p223_p4 = pnand %p222_p3, %p216_p0 }
  0x12   :  { %190 = vmatpush3.bf16.msra.mxu0 %v210_v5 }
  0x13   :  { %191 = vmatprep.subr.bf16.mxu0 %v239_v1 }
  0x16   :  { %192 = vmatpush3.bf16.msra.mxu0 %v211_v6 }
  0x17   :  { %193 = vmatprep.subr.bf16.mxu0 %v239_v1 }
  0x1a   :  { %194 = vmatpush3.bf16.msra.mxu0 %v212_v7 }
  0x1b   :  { %195 = vmatprep.subr.bf16.mxu0 %v239_v1 }
  0x1e   :  { %196 = vmatpush3.bf16.msra.mxu0 %v213_v8 }
  0x21   :  { %198 = vmatmul.mubr.bf16.vlgmr.msra.gmra.mrb[0].mxu0 %v214_v9 }
  0xf4   :  { %v127_v10 = vpop.f32.mrb[0].mxu0 }
  0xf5   :  { %v143_v11 = vmax.f32 %v127_v10, 0.0  ;;  %v199_v12 = vpop.f32.mrb[1].mxu0 }
  0xf6   :  { %v130_v13 = vpop.f32.mrb[2].mxu0 }
  0xf7   :  { %145 = vst [vmem:[#allocation3] sm:$0xff] %v143_v11  ;;  %v144_v14 = vmax.f32 %v130_v13, 0.0  ;;  %v200_v15 = vpop.f32.mrb[3].mxu0 }
  0xf9   :  { %146 = vst [vmem:[#allocation3 + $0x8] sm:$0xff] %v144_v14 }
  0xfa   :  { %226 = shalt.err (!%p223_p4)
}
  0xfb   :  { %s227_s30 = scalar_lea.hbm %s300_s2, 256 }
  0xfc   :  { %p228_p5 = scmp.ne.s32.totalorder %s300_s2, %s227_s30  ;;  %p231_p6 = scmp.lt.u32.totalorder %s227_s30, %s300_s2 }
  0xfe   :  { %p233_p7 = pnand %p231_p6, %p228_p5 }
 0x100   :  { %236 = shalt.err (!%p233_p7)
}
 0x101   :  { %s242_s7 = smov 128   ;;  %s243_s8 = smov 8  }
 0x102   :  { %158 = dma.vmem_to_hbm [thread:$0]  %s153_s28, 256, %s300_s2, [#allocation4], %s242_s7, %s242_s7, %s243_s8  }
 0x103   :  { %237 = dma.done.wait [#allocation4], 256  }
 0x104   :  { %238 = vsyncadd [#allocation4], 4294967040 }
 0x105   :  { %162 = vsyncpa [#allocation4], 1 }

</bundles_post_ra>
